<compile_context>
chip_gen: v7x
topology: tpu7x:2x2x1
jax: 0.10.0
libtpu: 0.0.40
codegen_flags: <defaults>
</compile_context>

<pallas_src>
import jax
import jax.numpy as jnp
from jax.experimental import pallas as pl
from jax.experimental.pallas import tpu as pltpu


def _normalize_kernel(img_ref, scale_ref, bias_ref, out_ref):
    # img_ref / out_ref: (row_tile, lane_tile)
    # scale_ref / bias_ref: (row_tile, 1)  -> broadcast over lanes
    out_ref[...] = img_ref[...] * scale_ref[...] + bias_ref[...]


def _choose_tiles(n_rows, hw, itemsize, target_bytes=2 * 1024 * 1024):
    """Pick a lane-dense (row_tile, lane_tile) block of roughly target_bytes."""
    # Lane tile: largest multiple of 128 (<= 2048) that divides H*W; fall back
    # to the full lane extent (full-dim blocks are always legal).
    lane_tile = hw
    for t in range(2048, 0, -128):
        if t <= hw and hw % t == 0:
            lane_tile = t
            break

    # Row tile: fill ~target_bytes per buffer; must be a multiple of 8 (or the
    # full row extent) and evenly divide n_rows so no padding blocks are needed.
    rows_budget = max(1, target_bytes // (lane_tile * itemsize))
    if n_rows <= 8:
        return n_rows, lane_tile
    row_tile = min(n_rows, rows_budget)
    row_tile = max(8, (row_tile // 8) * 8)
    while row_tile > 8 and n_rows % row_tile != 0:
        row_tile -= 8
    if n_rows % row_tile != 0:
        # No multiple-of-8 divisor: take the whole row extent (full-dim block).
        row_tile = n_rows
    return row_tile, lane_tile


def normalization_forward(img, mean, std):
    """(img - mean) / std with mean/std shaped (C,1,1), img shaped (B,C,H,W)."""
    B, C, H, W = img.shape
    assert mean.shape == (C, 1, 1) and std.shape == (C, 1, 1)

    N, HW = B * C, H * W
    x = img.reshape(N, HW)

    # Fold the per-channel affine: (x - m)/s == x * (1/s) + (-m/s).
    scale_c = (1.0 / std.reshape(C)).astype(img.dtype)
    bias_c = (-mean.reshape(C) / std.reshape(C)).astype(img.dtype)
    scale = jnp.tile(scale_c, B).reshape(N, 1)   # per-row (B*C, 1)
    bias = jnp.tile(bias_c, B).reshape(N, 1)

    row_tile, lane_tile = _choose_tiles(N, HW, jnp.dtype(img.dtype).itemsize)
    grid = (N // row_tile, HW // lane_tile)

    out = pl.pallas_call(
        _normalize_kernel,
        out_shape=jax.ShapeDtypeStruct((N, HW), img.dtype),
        grid_spec=pltpu.PrefetchScalarGridSpec(
            num_scalar_prefetch=0,
            grid=grid,
            in_specs=[
                pl.BlockSpec((row_tile, lane_tile), lambda i, j: (i, j)),
                pl.BlockSpec((row_tile, 1), lambda i, j: (i, 0)),
                pl.BlockSpec((row_tile, 1), lambda i, j: (i, 0)),
            ],
            out_specs=pl.BlockSpec((row_tile, lane_tile), lambda i, j: (i, j)),
        ),
        compiler_params=pltpu.CompilerParams(
            # Pure elementwise: every axis is independent -> megacore-shardable.
            dimension_semantics=("parallel", "parallel"),
        ),
    )(x, scale, bias)
    return out.reshape(B, C, H, W)


if __name__ == "__main__":
    key = jax.random.PRNGKey(0)

    B, C, H, W = 2, 4, 16, 16
    img = jax.random.normal(key, (B, C, H, W), dtype=jnp.float32)

    # Deterministic "parameters" (ImageNet-like mean/std), shaped (C, 1, 1)
    # exactly as the PyTorch module stores them.
    mean = jnp.array([0.485, 0.456, 0.406, 0.5], dtype=jnp.float32).reshape(C, 1, 1)
    std = jnp.array([0.229, 0.224, 0.225, 0.25], dtype=jnp.float32).reshape(C, 1, 1)

    out = normalization_forward(img, mean, std)
    out = jax.block_until_ready(out)

    # Reference check in plain JAX (same broadcasting as PyTorch).
    ref = (img - mean[None]) / std[None]
    assert out.shape == (B, C, H, W)
    assert jnp.allclose(out, ref, atol=1e-5), "mismatch vs reference"

    print("KERNEL_OK")
</pallas_src>

<mosaic_0001>
module attributes {stable_mosaic.version = 11 : i64} {
  func.func @_normalize_kernel(%arg0: i32, %arg1: i32, %arg2: memref<8x256xf32, #tpu.memory_space<vmem>>, %arg3: memref<8x1xf32, #tpu.memory_space<vmem>>, %arg4: memref<8x1xf32, #tpu.memory_space<vmem>>, %arg5: memref<8x256xf32, #tpu.memory_space<vmem>>) attributes {dimension_semantics = [#tpu.dimension_semantics<parallel>, #tpu.dimension_semantics<parallel>], iteration_bounds = array<i64: 1, 1>, scalar_prefetch = 0 : i64, scratch_operands = 0 : i64, tpu.core_type = #tpu.core_type<tc>, window_params = [{transform_indices = @transform_0, window_bounds = array<i64: 8, 256>}, {transform_indices = @transform_1, window_bounds = array<i64: 8, 1>}, {transform_indices = @transform_2, window_bounds = array<i64: 8, 1>}, {transform_indices = @transform_3, window_bounds = array<i64: 8, 256>}]} {
    %c0 = arith.constant 0 : index
    %c0_0 = arith.constant 0 : index
    %0 = vector.load %arg2[%c0, %c0_0] : memref<8x256xf32, #tpu.memory_space<vmem>>, vector<8x256xf32>
    %c0_1 = arith.constant 0 : index
    %c0_2 = arith.constant 0 : index
    %1 = vector.load %arg3[%c0_1, %c0_2] : memref<8x1xf32, #tpu.memory_space<vmem>>, vector<8x1xf32>
    %2 = vector.broadcast %1 : vector<8x1xf32> to vector<8x256xf32>
    %3 = arith.mulf %0, %2 : vector<8x256xf32>
    %c0_3 = arith.constant 0 : index
    %c0_4 = arith.constant 0 : index
    %4 = vector.load %arg4[%c0_3, %c0_4] : memref<8x1xf32, #tpu.memory_space<vmem>>, vector<8x1xf32>
    %5 = vector.broadcast %4 : vector<8x1xf32> to vector<8x256xf32>
    %6 = arith.addf %3, %5 : vector<8x256xf32>
    %c0_5 = arith.constant 0 : index
    %c0_6 = arith.constant 0 : index
    %7 = vector.load %arg5[%c0_5, %c0_6] : memref<8x256xf32, #tpu.memory_space<vmem>>, vector<8x256xf32>
    tpu.vector_store %arg5[%c0_5, %c0_6], %6 {strides = array<i32>} : memref<8x256xf32, #tpu.memory_space<vmem>>, vector<8x256xf32>,
    return
  }
  func.func @transform_0(%arg0: i32, %arg1: i32) -> (i32, i32) {
    %c0_i32 = arith.constant 0 : i32
    return %arg0, %arg1 : i32, i32
  }
  func.func @transform_1(%arg0: i32, %arg1: i32) -> (i32, i32) {
    %c0_i32 = arith.constant 0 : i32
    %c0_i32_0 = arith.constant 0 : i32
    return %arg0, %c0_i32 : i32, i32
  }
  func.func @transform_2(%arg0: i32, %arg1: i32) -> (i32, i32) {
    %c0_i32 = arith.constant 0 : i32
    %c0_i32_0 = arith.constant 0 : i32
    return %arg0, %c0_i32 : i32, i32
  }
  func.func @transform_3(%arg0: i32, %arg1: i32) -> (i32, i32) {
    %c0_i32 = arith.constant 0 : i32
    return %arg0, %arg1 : i32, i32
  }
}

</mosaic_0001>

<bundles_post_ra>
// kernel: tpu_custom_call.1
= control target key start
LH: loop header
LB: loop body
LE: loop exit
PB: predicated region body
PF: predicated region fallthrough
CT: control target
= control target key end

     0   :  { %s122_s0 = inlined_call_operand.vmem [shape: f32[8,256], index: 0, kind: input, shape index: {}]   ;;  %s123_s1 = inlined_call_operand.vmem [shape: f32[8,1], index: 1, kind: input, shape index: {}]   ;;  %s124_s2 = inlined_call_operand.vmem [shape: f32[8,1], index: 2, kind: input, shape index: {}]   ;;  %s125_s3 = inlined_call_operand.hbm [shape: f32[8,256], index: 3, kind: output, shape index: {}]  }
   0x1   :  { %v17_v0 = vld [vmem:[%s123_s1] sm:$0xff] }
   0x2   :  { %8 = vsyncpa [#allocation3], 0  ;;  %v76_v1 = vmov 0   ;;  %v25_v2 = vld [vmem:[%s124_s2] sm:$0xff]  ;;  %v16_v5 = vld [vmem:[%s122_s0 + $0x8] sm:$0xff]  ;;  %s77_s20 = smov [#allocation2]  }
   0x3   :  { %51 = vset.pattern.permute.xlu0 %v76_v1  ;;  %v15_v4 = vld [vmem:[%s122_s0] sm:$0xff]  ;;  %s41_s1 = sshll.u32 %s77_s20, 4  ;;  %s42_s1 = int_to_ptr.vmem [resolvable:$true] %s41_s1 }
   0x4   :  { %20 = vperm.xlu0 %51, %v17_v0   ;;  %s52_s2 = scalar_lea.vmem %s42_s1, 256  ;;  %p57_p1 = scmp.lt.s32.totalorder %s42_s1, %s42_s1 }
   0x5   :  { %p53_p0 = scmp.ne.s32.totalorder %s42_s1, %s52_s2  ;;  %p58_p2 = scmp.lt.s32.totalorder %s52_s2, %s52_s2 }
   0x7   :  { %p59_p3 = por %p58_p2, %p57_p1 }
   0x8   :  { %28 = vperm.xlu0 %51, %v25_v2  }
   0x9   :  { %p60_p4 = pnand %p59_p3, %p53_p0 }
  0x83   :  { %v21_v3 = vpop.permute.xlu0 %20 }
  0x84   :  { %v23_v6 = vmul.f32 %v21_v3, %v15_v4  ;;  %v24_v7 = vmul.f32 %v21_v3, %v16_v5 }
  0x87   :  { %v29_v8 = vpop.permute.xlu0 %28 }
  0x88   :  { %v31_v9 = vadd.f32 %v29_v8, %v23_v6  ;;  %v32_v10 = vadd.f32 %v29_v8, %v24_v7 }
  0x8a   :  { %33 = vst [vmem:[#allocation2] sm:$0xff] %v31_v9  ;;  %34 = vst [vmem:[#allocation2 + $0x8] sm:$0xff] %v32_v10 }
  0x8b   :  { %63 = shalt.err (!%p60_p4)
}
  0x8c   :  { %s64_s0 = scalar_lea.hbm %s125_s3, 256 }
  0x8d   :  { %p65_p5 = scmp.ne.s32.totalorder %s125_s3, %s64_s0  ;;  %p68_p6 = scmp.lt.u32.totalorder %s64_s0, %s125_s3 }
  0x8f   :  { %p70_p7 = pnand %p68_p6, %p65_p5 }
  0x91   :  { %73 = shalt.err (!%p70_p7)
}
  0x92   :  { %44 = dma.vmem_to_hbm [thread:$0]  %s42_s1, 256, %s125_s3, [#allocation3]  }
  0x93   :  { %74 = dma.done.wait [#allocation3], 256  }
  0x94   :  { %75 = vsyncadd [#allocation3], 4294967040 }
  0x95   :  { %48 = vsyncpa [#allocation3], 1 }

</bundles_post_ra>
